<compile_context>
chip_gen: v7x
topology: tpu7x:2x2x1
jax: 0.10.0
libtpu: 0.0.40
codegen_flags: <defaults>
</compile_context>

<pallas_src>
import jax
import jax.numpy as jnp
from jax.experimental import pallas as pl
from jax.experimental.pallas import tpu as pltpu


def _identity_kernel(x_ref, o_ref):
    # Whole-tile load / store: the forward pass has no computation.
    o_ref[...] = x_ref[...]


def empty_forward(x: jax.Array) -> jax.Array:
    """Pallas stand-in for Model.forward (a no-op in the reference).

    Routes the tensor through a tiled VMEM identity kernel and returns it
    unchanged (same shape, same dtype).
    """
    orig_shape = x.shape
    dtype = x.dtype
    n = int(x.size)
    itemsize = jnp.dtype(dtype).itemsize
    # Packed-layout sublane multiple: f32 -> 8, bf16 -> 16, int8/fp8 -> 32.
    sublane = max(8, 32 // itemsize)

    # Pick the widest lane-dense column count that divides n exactly (no padding).
    cols = None
    for c in (8192, 4096, 2048, 1024, 512, 256, 128):
        if n % c == 0:
            cols = c
            break
    if cols is None:
        cols = 1024  # tiny / awkward sizes: pad up once below
    rows = -(-n // cols)  # ceil

    # Target ~4 MiB per block: with 1 input + 1 output double-buffered that is
    # ~16 MiB of VMEM — safe on v7x (64 MiB physical) and within default scoped
    # limits on v5e/v6e without raising vmem_limit_bytes.
    target_block_bytes = 4 * 1024 * 1024
    tile_r = max(sublane,
                 (target_block_bytes // (cols * itemsize)) // sublane * sublane)

    if rows <= tile_r:
        # Single block covering the full array: block dims == array dims,
        # so no (sublane, 128) divisibility constraint applies to rows.
        tile_r = rows
        rows_padded = rows
    else:
        # Pad rows up to an exact multiple of tile_r so no tail rows are dropped.
        rows_padded = -(-rows // tile_r) * tile_r

    padded_n = rows_padded * cols
    flat = x.reshape(-1)
    if padded_n != n:
        flat = jnp.pad(flat, (0, padded_n - n))  # single pad op, only when needed
    x2d = flat.reshape(rows_padded, cols)

    grid = (rows_padded // tile_r,)

    out2d = pl.pallas_call(
        _identity_kernel,
        out_shape=jax.ShapeDtypeStruct((rows_padded, cols), dtype),
        grid_spec=pltpu.PrefetchScalarGridSpec(
            num_scalar_prefetch=0,
            grid=grid,
            in_specs=[pl.BlockSpec((tile_r, cols), lambda i: (i, 0))],
            out_specs=pl.BlockSpec((tile_r, cols), lambda i: (i, 0)),
        ),
        compiler_params=pltpu.CompilerParams(
            dimension_semantics=("parallel",),
        ),
        # Identity copy: reuse the input HBM buffer for the output.
        input_output_aliases={0: 0},
    )(x2d)

    if padded_n != n:
        return out2d.reshape(-1)[:n].reshape(orig_shape)
    return out2d.reshape(orig_shape)


if __name__ == "__main__":
    key = jax.random.PRNGKey(0)
    # Small NCHW input consistent with a typical vision-model forward.
    x = jax.random.normal(key, (2, 4, 16, 16), dtype=jnp.float32)

    fwd = jax.jit(empty_forward)
    y = fwd(x)
    jax.block_until_ready(y)

    # Sanity: identity semantics (the original forward performs no compute).
    assert y.shape == x.shape and y.dtype == x.dtype
    assert bool(jnp.allclose(y, x))

    print("KERNEL_OK")
</pallas_src>

<mosaic_0001>
module attributes {stable_mosaic.version = 11 : i64} {
  func.func @_identity_kernel(%arg0: i32, %arg1: memref<1x2048xf32, #tpu.memory_space<vmem>>, %arg2: memref<1x2048xf32, #tpu.memory_space<vmem>>) attributes {dimension_semantics = [#tpu.dimension_semantics<parallel>], iteration_bounds = array<i64: 1>, scalar_prefetch = 0 : i64, scratch_operands = 0 : i64, tpu.core_type = #tpu.core_type<tc>, window_params = [{transform_indices = @transform_0, window_bounds = array<i64: 1, 2048>}, {transform_indices = @transform_1, window_bounds = array<i64: 1, 2048>}]} {
    %c0 = arith.constant 0 : index
    %c0_0 = arith.constant 0 : index
    %0 = vector.load %arg1[%c0, %c0_0] : memref<1x2048xf32, #tpu.memory_space<vmem>>, vector<1x2048xf32>
    %c0_1 = arith.constant 0 : index
    %c0_2 = arith.constant 0 : index
    %1 = vector.load %arg2[%c0_1, %c0_2] : memref<1x2048xf32, #tpu.memory_space<vmem>>, vector<1x2048xf32>
    tpu.vector_store %arg2[%c0_1, %c0_2], %0 {strides = array<i32>} : memref<1x2048xf32, #tpu.memory_space<vmem>>, vector<1x2048xf32>,
    return
  }
  func.func @transform_0(%arg0: i32) -> (i32, i32) {
    %c0_i32 = arith.constant 0 : i32
    %c0_i32_0 = arith.constant 0 : i32
    return %arg0, %c0_i32 : i32, i32
  }
  func.func @transform_1(%arg0: i32) -> (i32, i32) {
    %c0_i32 = arith.constant 0 : i32
    %c0_i32_0 = arith.constant 0 : i32
    return %arg0, %c0_i32 : i32, i32
  }
}

</mosaic_0001>

<bundles_post_ra>
// kernel: empty_forward.1
= control target key start
LH: loop header
LB: loop body
LE: loop exit
PB: predicated region body
PF: predicated region fallthrough
CT: control target
= control target key end

     0   :  { %s38_s0 = inlined_call_operand.vmem [shape: f32[1,2048], index: 0, kind: input, shape index: {}, may-alias: {0,1}]   ;;  %s39_s1 = inlined_call_operand.vmem [shape: f32[1,2048], index: 1, kind: output, shape index: {}, may-alias: {0,1}]  }
   0x1   :  { %v8_v0 = vld [vmem:[%s38_s0] sm:$0xff]  ;;  %v9_v1 = vld [vmem:[%s38_s0 + $0x8] sm:$0xff] }
   0x2   :  { %10 = vst [vmem:[%s39_s1] sm:$0xff] %v8_v0  ;;  %11 = vst [vmem:[%s39_s1 + $0x8] sm:$0xff] %v9_v1 }

</bundles_post_ra>
